<compile_context>
chip_gen: v7x
topology: tpu7x:2x2x1
jax: 0.10.0
libtpu: 0.0.40
codegen_flags: <defaults>
</compile_context>

<pallas_src>
import functools

import jax
import jax.numpy as jnp
from jax.experimental import pallas as pl
from jax.experimental.pallas import tpu as pltpu

_LANE = 128
_BYTES_PER_BUFFER = 3 * 1024 * 1024   # ~3 MiB per pipeline buffer (4 buffers -> ~12 MiB)
_TARGET_STEPS = 8                     # aim for >= ~8 grid steps (pipelining + 2 TCs on v7x)
_VMEM_LIMIT_BYTES = 32 * 1024 * 1024  # explicit scoped-VMEM limit; safe on v5e/v6e/v7x
_MIN_PALLAS_ELEMS = 4096              # below this, plain jnp beats a kernel launch


def _round_up(a, b):
    return (a + b - 1) // b * b


def _bias_quant_kernel(scale_ref, x_ref, o_ref, *, bias_input, lo, hi):
    # scale' = scale * bias_input  (scalar, read from SMEM once per grid step)
    s = scale_ref[0] * bias_input
    # Upcast to f32 in-register; HBM I/O stays in the caller's dtype.
    x = x_ref[...].astype(jnp.float32)
    # clamp(x / scale', lo, hi) then round (half-to-even, matches torch.round).
    # Keep the divide (not x * (1/s)) for bit-exact .5-boundary behaviour; this
    # kernel is HBM-bound so the vector divide is hidden under DMA.
    x_int = jnp.round(jnp.clip(x / s, lo, hi))
    # TODO(synk): noise_scale != 0 path (add_noise_bias_rows clamped gaussian
    # noise) not implemented; the module default noise_scale=0 skips it.
    o_ref[...] = (x_int * s).astype(o_ref.dtype)


class BiasQuantizerRows:
    """JAX/Pallas port of Bias_quantizer_rows (int_flag=False forward path)."""

    def __init__(self, bit=8, rows=1, bias_input=1, all_positive=False,
                 symmetric=True, int_flag=False, noise_scale=0):
        self.bit = bit
        self.rows = rows
        self.bias_input = float(bias_input)
        if all_positive:
            assert not symmetric, "Positive quantization cannot be symmetric"
            self.thd_neg = 0
            self.thd_pos = 2 ** bit - 1
        elif symmetric:
            self.thd_neg = -2 ** (bit - 1) + 1
            self.thd_pos = 2 ** (bit - 1) - 1
        else:
            raise ValueError(
                "Unsupported config: all_positive=False with symmetric=False "
                "leaves thresholds undefined (same as the PyTorch module).")
        self.noise_scale = noise_scale
        self.int_flag = int_flag

    # ---------------- plain-jnp path (small inputs / vector scale) -----------
    def _jnp_quant(self, x, scale_f32, lo, hi):
        s = scale_f32 * self.bias_input
        x_int = jnp.round(jnp.clip(x.astype(jnp.float32) / s, lo, hi))
        return (x_int * s).astype(x.dtype)

    # ---------------- pallas path (2-D lane-dense slab) ----------------------
    def _pallas_2d(self, x2d, scale_arr, lo, hi):
        rows = x2d.shape[0]
        dtype = x2d.dtype
        itemsize = jnp.dtype(dtype).itemsize

        # Sublane alignment depends on dtype packing (f32: 8, bf16: 16, i8: 32).
        sub_mult = 8 * max(1, 4 // itemsize)
        # Byte-budgeted max rows per block (~3 MiB per buffer).
        block_r_max = max(sub_mult,
                          (_BYTES_PER_BUFFER // (_LANE * itemsize)) // sub_mult * sub_mult)
        # Aim for >= _TARGET_STEPS roughly balanced grid steps, clamped by the
        # byte budget and the (sub_mult-rounded) array size.
        block_r = _round_up(pl.cdiv(rows, _TARGET_STEPS), sub_mult)
        block_r = min(block_r, block_r_max, _round_up(rows, sub_mult))
        grid = (pl.cdiv(rows, block_r),)

        kernel = functools.partial(
            _bias_quant_kernel, bias_input=self.bias_input, lo=lo, hi=hi)

        return pl.pallas_call(
            kernel,
            out_shape=jax.ShapeDtypeStruct((rows, _LANE), dtype),
            grid=grid,
            in_specs=[
                pl.BlockSpec(memory_space=pltpu.MemorySpace.SMEM),   # scalar scale
                pl.BlockSpec((block_r, _LANE), lambda i: (i, 0)),    # x tile
            ],
            out_specs=pl.BlockSpec((block_r, _LANE), lambda i: (i, 0)),
            compiler_params=pltpu.CompilerParams(
                dimension_semantics=("parallel",),
                vmem_limit_bytes=_VMEM_LIMIT_BYTES),
        )(scale_arr, x2d)

    # ---------------- public forward -----------------------------------------
    def __call__(self, x, scale):
        assert self.noise_scale == 0, "noise path not implemented"
        # TODO(synk): int_flag=True returns (x_int, scale) tuple; not kernelized.
        assert not self.int_flag, "int_flag path returns tuple; not kernelized"

        lo = float(self.thd_neg * self.rows)
        hi = float(self.thd_pos * self.rows)
        orig_shape = x.shape
        n = x.size

        scale_f32 = jnp.asarray(scale, dtype=jnp.float32)
        # Per-channel / broadcast scale: faithful jnp broadcasting (the kernel
        # would otherwise silently use only element 0).
        if scale_f32.size != 1:
            return self._jnp_quant(x, scale_f32, lo, hi).reshape(orig_shape)

        # Size-gated fallback: true bias-sized inputs are a handful of vregs of
        # work; a standalone pallas_call would be pure dispatch overhead.
        if n < _MIN_PALLAS_ELEMS:
            return self._jnp_quant(x, scale_f32, lo, hi).reshape(orig_shape)

        scale_arr = scale_f32.reshape(1)
        x_flat = x.reshape(-1)
        rem = n % _LANE

        if rem == 0:
            # Lane-aligned: free reshape, single-pass kernel.
            out2d = self._pallas_2d(x_flat.reshape(-1, _LANE), scale_arr, lo, hi)
            return out2d.reshape(orig_shape)

        # Ragged: kernel on the lane-aligned prefix, jnp on the <128-elem tail.
        # TODO(synk): fully single-pass ragged path (pl.ANY + masked stores) not
        # implemented; prefix + tiny tail avoids padding the whole array.
        n_main = n - rem
        main2d = self._pallas_2d(x_flat[:n_main].reshape(-1, _LANE), scale_arr, lo, hi)
        tail = self._jnp_quant(x_flat[n_main:], scale_f32, lo, hi)
        return jnp.concatenate([main2d.reshape(-1), tail]).reshape(orig_shape)


def _reference(x, scale, quant: BiasQuantizerRows):
    s = jnp.asarray(scale, dtype=jnp.float32) * quant.bias_input
    x_int = jnp.round(
        jnp.clip(x.astype(jnp.float32) / s,
                 quant.thd_neg * quant.rows, quant.thd_pos * quant.rows))
    return (x_int * s).astype(x.dtype)


if __name__ == "__main__":
    key = jax.random.PRNGKey(0)
    k1, k2, k3, k4 = jax.random.split(key, 4)

    quant = BiasQuantizerRows(bit=8, rows=4, bias_input=2,
                              symmetric=True, int_flag=False, noise_scale=0)
    scale = jnp.float32(0.0123)

    # 1) True bias-sized input (32 channels) -> jnp fallback.
    x_small = jax.random.normal(k1, (32,), dtype=jnp.float32) * 0.5
    out_small = jax.block_until_ready(quant(x_small, scale))
    ref_small = _reference(x_small, scale, quant)
    assert out_small.shape == x_small.shape and out_small.dtype == x_small.dtype
    assert jnp.allclose(out_small, ref_small, atol=1e-6, rtol=1e-6)

    # 2) Lane-aligned f32 input (64 x 128 = 8192 elems) -> Pallas path, multi-step grid.
    x_f32 = jax.random.normal(k2, (64, 128), dtype=jnp.float32) * 0.5
    out_f32 = jax.block_until_ready(quant(x_f32, scale))
    ref_f32 = _reference(x_f32, scale, quant)
    assert out_f32.shape == x_f32.shape and out_f32.dtype == jnp.float32
    assert jnp.allclose(out_f32, ref_f32, atol=1e-6, rtol=1e-6)

    # 3) Ragged bf16 input (5000 elems) -> Pallas prefix (partial blocks) + jnp tail.
    x_bf16 = (jax.random.normal(k3, (5000,), dtype=jnp.float32) * 0.5).astype(jnp.bfloat16)
    out_bf16 = jax.block_until_ready(quant(x_bf16, scale))
    ref_bf16 = _reference(x_bf16, scale, quant)
    assert out_bf16.shape == x_bf16.shape and out_bf16.dtype == jnp.bfloat16
    assert jnp.allclose(out_bf16.astype(jnp.float32), ref_bf16.astype(jnp.float32),
                        atol=1e-2, rtol=1e-2)

    # 4) Per-channel scale -> jnp broadcasting fallback (faithful to torch).
    x_pc = jax.random.normal(k4, (4, 32), dtype=jnp.float32) * 0.5
    scale_pc = jnp.linspace(0.01, 0.02, 32, dtype=jnp.float32)
    out_pc = jax.block_until_ready(quant(x_pc, scale_pc))
    ref_pc = _reference(x_pc, scale_pc, quant)
    assert out_pc.shape == x_pc.shape and out_pc.dtype == jnp.float32
    assert jnp.allclose(out_pc, ref_pc, atol=1e-6, rtol=1e-6)

    print("KERNEL_OK")
</pallas_src>

<mosaic_0001>
module attributes {stable_mosaic.version = 11 : i64} {
  func.func @_bias_quant_kernel(%arg0: i32, %arg1: memref<1xf32, #tpu.memory_space<smem>>, %arg2: memref<8x128xf32, #tpu.memory_space<vmem>>, %arg3: memref<8x128xf32, #tpu.memory_space<vmem>>) attributes {dimension_semantics = [#tpu.dimension_semantics<parallel>], iteration_bounds = array<i64: 8>, scalar_prefetch = 0 : i64, scratch_operands = 0 : i64, tpu.core_type = #tpu.core_type<tc>, window_params = [{transform_indices = @transform_0, window_bounds = array<i64: 1>}, {transform_indices = @transform_1, window_bounds = array<i64: 8, 128>}, {transform_indices = @transform_2, window_bounds = array<i64: 8, 128>}]} {
    %c0 = arith.constant 0 : index
    %0 = memref.load %arg1[%c0] : memref<1xf32, #tpu.memory_space<smem>>
    %cst = arith.constant 2.000000e+00 : f32
    %1 = arith.mulf %0, %cst : f32
    %c0_0 = arith.constant 0 : index
    %c0_1 = arith.constant 0 : index
    %2 = vector.load %arg2[%c0_0, %c0_1] : memref<8x128xf32, #tpu.memory_space<vmem>>, vector<8x128xf32>
    %3 = vector.broadcast %1 : f32 to vector<8x128xf32>
    %4 = arith.divf %2, %3 : vector<8x128xf32>
    %cst_2 = arith.constant -5.080000e+02 : f32
    %cst_3 = arith.constant 5.080000e+02 : f32
    %5 = vector.broadcast %cst_2 : f32 to vector<8x128xf32>
    %6 = arith.maximumf %5, %4 : vector<8x128xf32>
    %7 = vector.broadcast %cst_3 : f32 to vector<8x128xf32>
    %8 = arith.minimumf %7, %6 : vector<8x128xf32>
    %9 = math.roundeven %8 : vector<8x128xf32>
    %10 = vector.broadcast %1 : f32 to vector<8x128xf32>
    %11 = arith.mulf %9, %10 : vector<8x128xf32>
    %c0_4 = arith.constant 0 : index
    %c0_5 = arith.constant 0 : index
    %12 = vector.load %arg3[%c0_4, %c0_5] : memref<8x128xf32, #tpu.memory_space<vmem>>, vector<8x128xf32>
    tpu.vector_store %arg3[%c0_4, %c0_5], %11 {strides = array<i32>} : memref<8x128xf32, #tpu.memory_space<vmem>>, vector<8x128xf32>,
    return
  }
  func.func @transform_0(%arg0: i32) -> i32 {
    %c0_i32 = arith.constant 0 : i32
    %c0_i32_0 = arith.constant 0 : i32
    return %c0_i32 : i32
  }
  func.func @transform_1(%arg0: i32) -> (i32, i32) {
    %c0_i32 = arith.constant 0 : i32
    %c0_i32_0 = arith.constant 0 : i32
    return %arg0, %c0_i32 : i32, i32
  }
  func.func @transform_2(%arg0: i32) -> (i32, i32) {
    %c0_i32 = arith.constant 0 : i32
    %c0_i32_0 = arith.constant 0 : i32
    return %arg0, %c0_i32 : i32, i32
  }
}

</mosaic_0001>

<bundles_post_ra>
// kernel: tpu_custom_call.1
= control target key start
LH: loop header
LB: loop body
LE: loop exit
PB: predicated region body
PF: predicated region fallthrough
CT: control target
= control target key end

     0   :  { %s594_s0 = inlined_call_operand.<no memory space> [shape: f32[1], index: 0, kind: input, shape index: {}]   ;;  %s595_s1 = inlined_call_operand.hbm [shape: f32[64,128], index: 1, kind: input, shape index: {}]   ;;  %s596_s2 = inlined_call_operand.hbm [shape: f32[64,128], index: 2, kind: output, shape index: {}]  }
   0x1   :  { %7 = sst [smem:[#allocation2]] %s594_s0 }
   0x2   :  { %8 = vsyncpa [#allocation4], 0 }
   0x3   :  { %10 = vsyncpa [#allocation4 + $0x1], 0 }
   0x4   :  { %11 = vsyncpa [#allocation5], 0 }
   0x5   :  { %13 = vsyncpa [#allocation5 + $0x1], 0  ;;  %s435_s11 = smov 0   ;;  %s437_s12 = smov 0  }
   0x6   :  { %s439_s13 = smov 0   ;;  %s441_s14 = smov 0  }
   0x7 LB: > { %s456_s0 = sadd.s32 4294967295, %s413_s14   ;;  %s255_s15 = sadd.s32 4294967294, %s413_s14   ;;  %s413_s14 = sphi %s441_s14, %s610_s14   ;;  %s409_s13 = sphi %s439_s13, %s609_s13   ;;  %s405_s12 = sphi %s437_s12, %s608_s12   ;;  %s401_s11 = sphi %s435_s11, %s607_s11  }
   0x8   : > { %s460_s16 = sadd.s32 1, %s413_s14   ;;  %s47_s17 = sadd.s32 1, %s409_s13 }
   0x9   : > { %s44_s18 = ssub.s32 %s413_s14, %s460_s16  ;;  %p54_p0 = scmp.ne.s32.totalorder %s409_s13, %s405_s12 }
   0xa   : > { %p45_p1 = scmp.eq.s32.totalorder %s44_s18, 0  ;;  %p55_p2 = scmp.eq.s32.totalorder %s413_s14, 0 }
   0xb   : > { %p60_p3 = scmp.ne.s32.totalorder %s405_s12, %s401_s11  ;;  %p61_p4 = scmp.eq.s32.totalorder %s456_s0, 0 }
   0xc   : > { %s472_s19 = scalar_select %p45_p1, %s409_s13, %s47_s17  }
   0xd   : > { %p474_p5 = por %p55_p2, %p54_p0  ;;  %p478_p6 = por %p61_p4, %p60_p3 }
   0xe   : > { %p84_p7 = scmp.eq.s32.totalorder %s456_s0, 7  ;;  %p90_p8 = scmp.eq.s32.totalorder %s255_s15, 7 }
   0xf   : > { %p281_p9 = scmp.lt.s32.totalorder %s413_s14, 8  ;;  %s113_s24 = sand.u32 1, %s409_s13  }
  0x10   : > { %p484_p10 = por %p84_p7, %p54_p0  ;;  %p488_p11 = por %p90_p8, %p60_p3 }
  0x11   : > { %s259_s25 = sshll.u32 %s413_s14, 7  ;;  %s258_s26 = sshll.u32 %s113_s24, 3 }
  0x12   : > { %s600_s22 = scalar_select %p484_p10, 1, 0 }
  0x13   : > { %s601_s23 = scalar_select %p488_p11, 1, 0 }
  0x14   : > { %s497_s29 = scalar_lea.hbm %s595_s1, %s259_s25  ;;  %s117_s30 = scalar_lea.vmem [#allocation3], %s258_s26 }
  0x15   : > { %s124_s3 = sshll.u32 %s117_s30, 4  ;;  %p501_p12 = pnand %p281_p9, %p474_p5  ;;  %s505_s3 = int_to_ptr.vmem [resolvable:$true] %s124_s3 }
  0x16   : > { %s114_s5 = scalar_lea.sflag [#allocation4], %s113_s24  ;;  %s317_s6 = scalar_lea.hbm %s497_s29, 128 }
  0x17   : > { %p318_p1 = scmp.ne.s32.totalorder %s497_s29, %s317_s6  ;;  %p319_p2 = pneg %p501_p12 }
  0x18   : > { %s322_s9 = scalar_lea.hbm %s595_s1, 1024  ;;  %p323_p5 = scmp.lt.u32.totalorder %s497_s29, %s595_s1 }
  0x19   : > { %p320_p3 = pnand %p319_p2, %p318_p1  ;;  %p324_p7 = scmp.lt.u32.totalorder %s322_s9, %s317_s6 }
  0x1a   : > { %p326_p9 = scmp.lt.u32.totalorder %s317_s6, %s497_s29 }
  0x1b   : > { %p321_p4 = pneg %p320_p3  ;;  %p325_p8 = por %p324_p7, %p323_p5 }
  0x1d   : > { %p327_p13 = por %p326_p9, %p325_p8 }
  0x1f   : > { %p328_p0 = pnand %p327_p13, %p321_p4 }
  0x21   : > { %331 = shalt.err (!%p328_p0)
}
  0x22   : > { %s332_s17 = scalar_lea.vmem %s505_s3, 128  ;;  %s415_s18 = smov [#allocation3]  }
  0x23   : > { %p333_p1 = scmp.ne.s32.totalorder %s505_s3, %s332_s17  ;;  %s337_s20 = sshll.u32 %s415_s18, 4  ;;  %s338_s20 = int_to_ptr.vmem [resolvable:$false] %s337_s20 }
  0x24   : > { %s339_s24 = scalar_lea.vmem %s338_s20, 256  ;;  %p340_p10 = scmp.lt.s32.totalorder %s505_s3, %s338_s20 }
  0x25   : > { %p335_p3 = pnand %p333_p1, %p319_p2  ;;  %p341_p5 = scmp.lt.s32.totalorder %s339_s24, %s332_s17 }
  0x27   : > { %p336_p11 = pneg %p335_p3  ;;  %p342_p7 = por %p341_p5, %p340_p10 }
  0x29   : > { %p343_p8 = pnand %p342_p7, %p336_p11 }
  0x2b   : > { %346 = shalt.err (!%p343_p8)
}
  0x2c   : > { %276 = dma.hbm_to_vmem [thread:$0]  (!%p501_p12), %s497_s29, 128, %s505_s3, %s114_s5  }
  0x2d   : > { %p603_p13 = scmp.lt.s32.totalorder %s413_s14, 9  ;;  %p604_p0 = scmp.ge.s32.totalorder %s413_s14, 1 }
  0x2f   : > { %p130_p2 = pnand %p604_p0, %p603_p13 }
  0x30   : > { %s539_s25 = sand.u32 (!%p130_p2), 1, %s405_s12  }
  0x31   : > { %133 = sbr.rel (%p130_p2) target bundleno = 99 (0x63), region = 28  ;;  %s261_s26 = sshll.u32 (!%p130_p2), %s539_s25, 3 }
  0x32   : > { %s136_s27 = scalar_lea.sflag (!%p130_p2), [#allocation4], %s539_s25  ;;  %s139_s28 = scalar_lea.vmem (!%p130_p2), [#allocation3], %s261_s26 }
  0x38   : > { %392 = dma.done.wait (%p478_p6), %s136_s27, 128  }
  0x39   : > { %394 = vsyncadd (%p478_p6), %s136_s27, 4294967168  ;;  %s160_s29 = sld [smem:[#allocation2]]  ;;  %v162_v1 = vld [vmem:[%s139_s28] sm:$0xff]  ;;  %s159_s3 = scalar_lea.vmem [#allocation6], %s261_s26 }
  0x3a   : > { %s185_s4 = sshll.u32 %s159_s3, 4  ;;  %s265_s5 = sshll.u32 %s456_s0, 7  ;;  %s548_s4 = int_to_ptr.vmem [resolvable:$true] %s185_s4 }
  0x3b   : > { %s553_s7 = scalar_lea.hbm %s596_s2, %s265_s5  ;;  %s172_s8 = scalar_lea.sflag [#allocation5], %s539_s25 }
  0x3c   : > { %s347_s9 = scalar_lea.vmem %s548_s4, 128  ;;  %p605_p10 = scmp.ne.s32.totalorder %s600_s22, 0 }
  0x3d   : > { %p348_p6 = scmp.ne.s32.totalorder %s548_s4, %s347_s9  ;;  %s416_s0 = smov [#allocation6]  }
  0x3e   : > { %s351_s10 = sshll.u32 %s416_s0, 4  ;;  %s352_s10 = int_to_ptr.vmem [resolvable:$false] %s351_s10 }
  0x3f   : > { %s161_s30 = smul.f32 2.0, %s160_s29  ;;  %p349_p11 = pnand %p348_p6, %p605_p10 }
  0x40   : > { %s353_s15 = scalar_lea.vmem %s352_s10, 256  ;;  %p354_p4 = scmp.lt.s32.totalorder %s548_s4, %s352_s10 }
  0x41   : > { %v163_v0 = vstv %s161_s30  ;;  %p350_p12 = pneg %p349_p11  ;;  %p355_p9 = scmp.lt.s32.totalorder %s353_s15, %s347_s9 }
  0x42   : > { %315 = vrcp.f32 %v163_v0 }
  0x43   : > { %p356_p1 = por %p355_p9, %p354_p4 }
  0x45   : > { %p357_p3 = pnand %p356_p1, %p350_p12 }
  0x4c   : > { %v316_v2 = vpop.eup %315 }
  0x4d   : > { %v165_v3 = vmul.f32 %v316_v2, %v162_v1 }
  0x4f   : > { %v263_v4 = vclamps-f32 %v165_v3, 508.0 }
  0x51   : > { %v268_v5 = vround.rtne.f32 %v263_v4 }
  0x53   : > { %v169_v6 = vmul.f32 %v268_v5, %v163_v0 }
  0x55   : > { %170 = vst [vmem:[%s159_s3] sm:$0xff] %v169_v6 }
  0x56   : > { %360 = shalt.err (!%p357_p3)
}
  0x57   : > { %s361_s17 = scalar_lea.hbm %s553_s7, 128  ;;  %s365_s24 = scalar_lea.hbm %s596_s2, 1024 }
  0x58   : > { %p362_p5 = scmp.ne.s32.totalorder %s553_s7, %s361_s17  ;;  %p366_p13 = scmp.lt.u32.totalorder %s553_s7, %s596_s2 }
  0x59   : > { %p367_p0 = scmp.lt.u32.totalorder %s365_s24, %s361_s17  ;;  %p369_p6 = scmp.lt.u32.totalorder %s361_s17, %s553_s7 }
  0x5a   : > { %p363_p7 = pnand %p362_p5, %p605_p10 }
  0x5b   : > { %p368_p2 = por %p367_p0, %p366_p13 }
  0x5c   : > { %p364_p8 = pneg %p363_p7 }
  0x5d   : > { %p370_p11 = por %p369_p6, %p368_p2 }
  0x5f   : > { %p371_p12 = pnand %p370_p11, %p364_p8 }
  0x61   : > { %374 = shalt.err (!%p371_p12)
}
  0x62   : > { %271 = dma.vmem_to_hbm [thread:$0]  (%p605_p10), %s548_s4, 128, %s553_s7, %s172_s8  }
  0x63 PF: > { %p282_p4 = scmp.ge.s32.totalorder %s413_s14, 2  ;;  %s197_s27 = sand.u32 1, %s401_s11  }
  0x64   : > { %p606_p9 = scmp.ne.s32.totalorder %s601_s23, 0  ;;  %s198_s28 = scalar_lea.sflag [#allocation5], %s197_s27 }
  0x66   : > { %p278_p1 = pnand %p282_p4, %p606_p9 }
  0x68   : > { %396 = dma.done.wait (!%p278_p1), %s198_s28, 128  }
  0x69   : > { %398 = vsyncadd (!%p278_p1), %s198_s28, 4294967168  ;;  %p16_p3 = scmp.ge.s32.totalorder %s460_s16, 10   ;;  %s607_s11 = smov %s405_s12 }
  0x6a   : > { %s608_s12 = smov %s409_s13  ;;  %s609_s13 = smov %s472_s19 }
  0x6b   : > { %s610_s14 = smov %s460_s16  ;;  %18 = sbr.rel (!%p16_p3) target bundleno = 7 (0x7), region = 73 }
  0x72   :  { %203 = vsyncpa [#allocation4], 1 }
  0x73   :  { %205 = vsyncpa [#allocation4 + $0x1], 1 }
  0x74   :  { %206 = vsyncpa [#allocation5], 1 }
  0x75   :  { %208 = vsyncpa [#allocation5 + $0x1], 1 }

</bundles_post_ra>
